<compile_context>
chip_gen: v7x
topology: tpu7x:2x2x1
jax: 0.10.0
libtpu: 0.0.40
codegen_flags: <defaults>
</compile_context>

<pallas_src>
from functools import partial

import jax
import jax.numpy as jnp
from jax import lax
from jax.experimental import pallas as pl
from jax.experimental.pallas import tpu as pltpu

LANE = 128        # TPU lane width
CHUNK = 512       # lanes per in-kernel chunk: (32, 512) f32 = 16 vregs
MAX_TILE = 16384  # cap on rows per grid step (step overhead amortization)


def _tpu_generation():
    """Best-effort TPU generation sniff (5 = conservative default)."""
    try:
        kind = jax.devices()[0].device_kind.lower()
    except Exception:
        return 5
    if "v7" in kind or "7x" in kind:
        return 7
    if "v6" in kind:
        return 6
    return 5


# ----------------------------------------------------------------------------
# Kernel: full MLP forward for one tile of batch points (transposed layout),
# chunked along lanes so intermediates stay in registers.
#   Layer 1 (in=2):  tanh(W1^T @ [t; x] + b1) via two VPU broadcast multiplies
#                    (mathematically identical to concat + matmul).
#   Layer 2:         (H, H) @ (H, chunk) on the MXU (f32 accumulation).
#   Layer 3 (out=1): VPU multiply + sublane reduce in f32 (no MXU for a
#                    width-1 output), then the final Tanh.
# ----------------------------------------------------------------------------
def burgernet_kernel(g_ref, w1t_ref, b1_ref, w2t_ref, b2_ref, w3_ref, b3_ref,
                     o_ref, *, chunk, n_chunks, compute_dtype):
    # Constant weights: load + cast ONCE, hoisted out of the chunk loop.
    w1t = w1t_ref[...].astype(compute_dtype)      # (H, 2)
    b1 = b1_ref[...].astype(compute_dtype)        # (H, 1)
    w2t = w2t_ref[...].astype(compute_dtype)      # (H, H)
    b2 = b2_ref[...]                              # (H, 1) f32
    w3 = w3_ref[...]                              # (H, 1) f32 (output stays f32)
    b3 = b3_ref[0]                                # scalar from SMEM

    def chunk_body(c, carry):
        start = pl.multiple_of(c * chunk, LANE)
        g = g_ref[:, pl.ds(start, chunk)]         # (2, chunk) f32
        t = g[0:1, :].astype(compute_dtype)       # (1, chunk)
        x = g[1:2, :].astype(compute_dtype)       # (1, chunk)

        # layer 1: (H, 1) * (1, chunk) broadcasts -> (H, chunk)
        h = jnp.tanh(w1t[:, 0:1] * t + w1t[:, 1:2] * x + b1)

        # layer 2: lane-dense MXU matmul with f32 accumulation
        z = jnp.dot(w2t, h, preferred_element_type=jnp.float32) + b2
        h = jnp.tanh(z.astype(compute_dtype))

        # layer 3 (width-1 output, also Tanh): VPU mul + sublane reduce, f32
        u = jnp.sum(w3 * h.astype(jnp.float32), axis=0, keepdims=True) + b3
        o_ref[:, pl.ds(start, chunk)] = jnp.tanh(u)   # (1, chunk) f32
        return carry

    lax.fori_loop(0, n_chunks, chunk_body, 0, unroll=True)


def burgernet_forward(t, x, params, *, tile_n=None, compute_dtype=None):
    """t, x: (N, 1) float32.  Returns u: (N, 1) float32."""
    (w1, b1), (w2, b2), (w3, b3) = params
    N = t.shape[0]
    H = w1.shape[1]

    gen = _tpu_generation()
    if compute_dtype is None:
        # bf16 EUP/VPU only exists on v6e/v7x; keep f32 on v5e / unknown.
        compute_dtype = jnp.bfloat16 if gen >= 6 else jnp.float32
    num_cores = 2 if gen >= 7 else 1   # v7x megacore; v5e/v6e single TC

    if tile_n is None:
        # Target `num_cores` grid steps (1 on v5e/v6e, 2 on v7x), capped.
        target = pl.cdiv(N, num_cores)
        tile_n = min(MAX_TILE, max(CHUNK, pl.cdiv(target, CHUNK) * CHUNK))
    assert tile_n % LANE == 0, "tile_n must be a multiple of 128 lanes"

    n_blocks = pl.cdiv(N, tile_n)
    if num_cores == 2 and n_blocks > 1 and n_blocks % 2 == 1:
        n_blocks += 1  # keep megacore sharding balanced on v7x
    N_pad = n_blocks * tile_n

    # In-kernel lane chunking setup.
    if tile_n % CHUNK == 0:
        chunk, n_chunks = CHUNK, tile_n // CHUNK
    else:
        chunk, n_chunks = tile_n, 1

    # Merged, lane-dense transposed input: [t; x] rows, batch on lanes.
    g = jnp.concatenate([t, x], axis=1).T                 # (2, N)
    g = jnp.pad(g, ((0, 0), (0, N_pad - N)))              # (2, N_pad)

    # Pre-transposed weights / biases for the (H, chunk) activation layout.
    w1t = w1.T                                  # (H, 2)
    b1c = b1.reshape(H, 1)                      # (H, 1)
    w2t = w2.T                                  # (H, H)
    b2c = b2.reshape(H, 1)                      # (H, 1)
    w3c = w3.reshape(H, 1)                      # (H, 1)
    b3s = b3.reshape(1).astype(jnp.float32)     # (1,) scalar -> SMEM (1-D)

    const = lambda shape: pl.BlockSpec(shape, lambda i: (0, 0))
    kernel = partial(burgernet_kernel, chunk=chunk, n_chunks=n_chunks,
                     compute_dtype=compute_dtype)

    out = pl.pallas_call(
        kernel,
        out_shape=jax.ShapeDtypeStruct((1, N_pad), jnp.float32),
        grid_spec=pltpu.PrefetchScalarGridSpec(
            num_scalar_prefetch=0,
            grid=(n_blocks,),
            in_specs=[
                pl.BlockSpec((2, tile_n), lambda i: (0, i)),   # [t; x] rows
                const((H, 2)),            # W1^T
                const((H, 1)),            # b1
                const((H, H)),            # W2^T
                const((H, 1)),            # b2
                const((H, 1)),            # w3 (column)
                pl.BlockSpec(memory_space=pltpu.MemorySpace.SMEM),  # b3 (1,)
            ],
            out_specs=pl.BlockSpec((1, tile_n), lambda i: (0, i)),  # lane-dense
        ),
        compiler_params=pltpu.CompilerParams(
            dimension_semantics=("parallel",)),
    )(g, w1t, b1c, w2t, b2c, w3c, b3s)

    return out[0, :N].reshape(N, 1)


# Pure-JAX reference (exact PyTorch semantics: concat -> Linear/Tanh stack).
def burgernet_ref(t, x, params):
    g = jnp.concatenate([t, x], axis=1)
    (w1, b1), (w2, b2), (w3, b3) = params
    h = jnp.tanh(g @ w1 + b1)
    h = jnp.tanh(h @ w2 + b2)
    return jnp.tanh(h @ w3 + b3)


def init_params(key, in_dim=2, hidden=32, out_dim=1):
    """Deterministic Linear init (PyTorch-style uniform bounds)."""
    ks = jax.random.split(key, 7)

    def linear(kw, kb, fan_in, fan_out):
        bound = 1.0 / jnp.sqrt(fan_in)
        w = jax.random.uniform(kw, (fan_in, fan_out), jnp.float32, -bound, bound)
        b = jax.random.uniform(kb, (1, fan_out), jnp.float32, -bound, bound)
        return w, b

    p1 = linear(ks[0], ks[1], in_dim, hidden)
    p2 = linear(ks[2], ks[3], hidden, hidden)
    p3 = linear(ks[4], ks[5], hidden, out_dim)
    # lamb01 / lamb02: learnable PDE-residual constants, unused in forward()
    consts = jax.random.normal(ks[6], (2,), jnp.float32)
    return (p1, p2, p3), consts


if __name__ == "__main__":
    key = jax.random.PRNGKey(0)
    k_param, k_t, k_x = jax.random.split(key, 3)

    params, consts = init_params(k_param, in_dim=2, hidden=32, out_dim=1)
    lamb01, lamb02 = consts[0], consts[1]   # parity with module attrs (unused)

    N = 256  # batch of (t, x) collocation points
    t = jax.random.normal(k_t, (N, 1), jnp.float32)
    x = jax.random.normal(k_x, (N, 1), jnp.float32)
    u_ref = burgernet_ref(t, x, params)

    # f32 path: bit-for-bit-ish check against the pure-JAX reference.
    u = jax.block_until_ready(
        burgernet_forward(t, x, params, compute_dtype=jnp.float32))
    assert u.shape == (N, 1)
    assert jnp.allclose(u, u_ref, atol=1e-5, rtol=1e-5), "f32 mismatch vs ref"

    # Auto-precision path (bf16 on v6e/v7x, f32 on v5e): loose sanity check.
    u_auto = jax.block_until_ready(burgernet_forward(t, x, params))
    assert u_auto.shape == (N, 1)
    assert bool(jnp.all(jnp.isfinite(u_auto)))
    assert jnp.allclose(u_auto, u_ref, atol=1e-1), "auto-precision mismatch"

    # Batch NOT a multiple of the tile + multi-chunk in-kernel loop exercised.
    N2 = 1300
    t2 = jax.random.normal(k_t, (N2, 1), jnp.float32)
    x2 = jax.random.normal(k_x, (N2, 1), jnp.float32)
    u2 = jax.block_until_ready(
        burgernet_forward(t2, x2, params, compute_dtype=jnp.float32,
                          tile_n=1024))
    assert u2.shape == (N2, 1)
    assert jnp.allclose(u2, burgernet_ref(t2, x2, params),
                        atol=1e-5, rtol=1e-5), "tiled/chunked mismatch vs ref"

    print("KERNEL_OK")
</pallas_src>

<mosaic_0001>
module attributes {stable_mosaic.version = 11 : i64} {
  func.func @burgernet_kernel(%arg0: i32, %arg1: memref<2x512xf32, #tpu.memory_space<vmem>>, %arg2: memref<32x2xf32, #tpu.memory_space<vmem>>, %arg3: memref<32x1xf32, #tpu.memory_space<vmem>>, %arg4: memref<32x32xf32, #tpu.memory_space<vmem>>, %arg5: memref<32x1xf32, #tpu.memory_space<vmem>>, %arg6: memref<32x1xf32, #tpu.memory_space<vmem>>, %arg7: memref<1xf32, #tpu.memory_space<smem>>, %arg8: memref<1x512xf32, #tpu.memory_space<vmem>>) attributes {dimension_semantics = [#tpu.dimension_semantics<parallel>], iteration_bounds = array<i64: 1>, scalar_prefetch = 0 : i64, scratch_operands = 0 : i64, tpu.core_type = #tpu.core_type<tc>, window_params = [{transform_indices = @transform_0, window_bounds = array<i64: 2, 512>}, {pipeline_mode = #tpu.pipeline_mode<synchronous>, transform_indices = @transform_1, window_bounds = array<i64: 32, 2>}, {pipeline_mode = #tpu.pipeline_mode<synchronous>, transform_indices = @transform_2, window_bounds = array<i64: 32, 1>}, {pipeline_mode = #tpu.pipeline_mode<synchronous>, transform_indices = @transform_3, window_bounds = array<i64: 32, 32>}, {pipeline_mode = #tpu.pipeline_mode<synchronous>, transform_indices = @transform_4, window_bounds = array<i64: 32, 1>}, {pipeline_mode = #tpu.pipeline_mode<synchronous>, transform_indices = @transform_5, window_bounds = array<i64: 32, 1>}, {transform_indices = @transform_6, window_bounds = array<i64: 1>}, {transform_indices = @transform_7, window_bounds = array<i64: 1, 512>}]} {
    %c0 = arith.constant 0 : index
    %c0_0 = arith.constant 0 : index
    %0 = vector.load %arg2[%c0, %c0_0] : memref<32x2xf32, #tpu.memory_space<vmem>>, vector<32x2xf32>
    %c0_1 = arith.constant 0 : index
    %c0_2 = arith.constant 0 : index
    %1 = vector.load %arg3[%c0_1, %c0_2] : memref<32x1xf32, #tpu.memory_space<vmem>>, vector<32x1xf32>
    %c0_3 = arith.constant 0 : index
    %c0_4 = arith.constant 0 : index
    %2 = vector.load %arg4[%c0_3, %c0_4] : memref<32x32xf32, #tpu.memory_space<vmem>>, vector<32x32xf32>
    %c0_5 = arith.constant 0 : index
    %c0_6 = arith.constant 0 : index
    %3 = vector.load %arg5[%c0_5, %c0_6] : memref<32x1xf32, #tpu.memory_space<vmem>>, vector<32x1xf32>
    %c0_7 = arith.constant 0 : index
    %c0_8 = arith.constant 0 : index
    %4 = vector.load %arg6[%c0_7, %c0_8] : memref<32x1xf32, #tpu.memory_space<vmem>>, vector<32x1xf32>
    %c0_9 = arith.constant 0 : index
    %5 = memref.load %arg7[%c0_9] : memref<1xf32, #tpu.memory_space<smem>>
    %c0_i32 = arith.constant 0 : i32
    %c512_i32 = arith.constant 512 : i32
    %6 = arith.muli %c0_i32, %c512_i32 : i32
    %7 = tpu.assume_multiple %6, 128 : i32
    %c0_10 = arith.constant 0 : index
    %8 = arith.index_cast %7 : i32 to index
    %9 = vector.load %arg1[%c0_10, %8] : memref<2x512xf32, #tpu.memory_space<vmem>>, vector<2x512xf32>
    %10 = vector.extract_strided_slice %9 {offsets = [0, 0], sizes = [1, 512], strides = [1, 1]} : vector<2x512xf32> to vector<1x512xf32>
    %11 = vector.extract_strided_slice %9 {offsets = [1, 0], sizes = [1, 512], strides = [1, 1]} : vector<2x512xf32> to vector<1x512xf32>
    %12 = vector.extract_strided_slice %0 {offsets = [0, 0], sizes = [32, 1], strides = [1, 1]} : vector<32x2xf32> to vector<32x1xf32>
    %13 = vector.broadcast %12 : vector<32x1xf32> to vector<32x512xf32>
    %14 = vector.broadcast %10 : vector<1x512xf32> to vector<32x512xf32>
    %15 = arith.mulf %13, %14 : vector<32x512xf32>
    %16 = vector.extract_strided_slice %0 {offsets = [0, 1], sizes = [32, 1], strides = [1, 1]} : vector<32x2xf32> to vector<32x1xf32>
    %17 = vector.broadcast %16 : vector<32x1xf32> to vector<32x512xf32>
    %18 = vector.broadcast %11 : vector<1x512xf32> to vector<32x512xf32>
    %19 = arith.mulf %17, %18 : vector<32x512xf32>
    %20 = arith.addf %15, %19 : vector<32x512xf32>
    %21 = vector.broadcast %1 : vector<32x1xf32> to vector<32x512xf32>
    %22 = arith.addf %20, %21 : vector<32x512xf32>
    %23 = math.tanh %22 : vector<32x512xf32>
    %cst = arith.constant dense<0.000000e+00> : vector<32x512xf32>
    %24 = tpu.matmul %2, %23, %cst {dimension_numbers = #tpu.dot_dimension_numbers<[1], [0], [0], [1], [0, 0, 1, 1], [], []>} : vector<32x32xf32>, vector<32x512xf32>, vector<32x512xf32> -> vector<32x512xf32>
    %25 = vector.broadcast %3 : vector<32x1xf32> to vector<32x512xf32>
    %26 = arith.addf %24, %25 : vector<32x512xf32>
    %27 = math.tanh %26 : vector<32x512xf32>
    %28 = vector.broadcast %4 : vector<32x1xf32> to vector<32x512xf32>
    %29 = arith.mulf %28, %27 : vector<32x512xf32>
    %cst_11 = arith.constant dense<0.000000e+00> : vector<512xf32>
    %30 = vector.multi_reduction <add>, %29, %cst_11 [0] : vector<32x512xf32> to vector<512xf32>
    %31 = vector.shape_cast %30 : vector<512xf32> to vector<1x512xf32>
    %32 = vector.broadcast %5 : f32 to vector<1x512xf32>
    %33 = arith.addf %31, %32 : vector<1x512xf32>
    %34 = math.tanh %33 : vector<1x512xf32>
    %c0_12 = arith.constant 0 : index
    %35 = arith.index_cast %7 : i32 to index
    %36 = vector.load %arg8[%c0_12, %35] : memref<1x512xf32, #tpu.memory_space<vmem>>, vector<1x512xf32>
    tpu.vector_store %arg8[%c0_12, %35], %34 {strides = array<i32>} : memref<1x512xf32, #tpu.memory_space<vmem>>, vector<1x512xf32>,
    %c1_i32 = arith.constant 1 : i32
    return
  }
  func.func @transform_0(%arg0: i32) -> (i32, i32) {
    %c0_i32 = arith.constant 0 : i32
    %c0_i32_0 = arith.constant 0 : i32
    return %c0_i32, %arg0 : i32, i32
  }
  func.func @transform_1(%arg0: i32) -> (i32, i32) {
    %c0_i32 = arith.constant 0 : i32
    %c0_i32_0 = arith.constant 0 : i32
    %c0_i32_1 = arith.constant 0 : i32
    return %c0_i32, %c0_i32_0 : i32, i32
  }
  func.func @transform_2(%arg0: i32) -> (i32, i32) {
    %c0_i32 = arith.constant 0 : i32
    %c0_i32_0 = arith.constant 0 : i32
    %c0_i32_1 = arith.constant 0 : i32
    return %c0_i32, %c0_i32_0 : i32, i32
  }
  func.func @transform_3(%arg0: i32) -> (i32, i32) {
    %c0_i32 = arith.constant 0 : i32
    %c0_i32_0 = arith.constant 0 : i32
    %c0_i32_1 = arith.constant 0 : i32
    return %c0_i32, %c0_i32_0 : i32, i32
  }
  func.func @transform_4(%arg0: i32) -> (i32, i32) {
    %c0_i32 = arith.constant 0 : i32
    %c0_i32_0 = arith.constant 0 : i32
    %c0_i32_1 = arith.constant 0 : i32
    return %c0_i32, %c0_i32_0 : i32, i32
  }
  func.func @transform_5(%arg0: i32) -> (i32, i32) {
    %c0_i32 = arith.constant 0 : i32
    %c0_i32_0 = arith.constant 0 : i32
    %c0_i32_1 = arith.constant 0 : i32
    return %c0_i32, %c0_i32_0 : i32, i32
  }
  func.func @transform_6(%arg0: i32) -> i32 {
    %c0_i32 = arith.constant 0 : i32
    %c0_i32_0 = arith.constant 0 : i32
    return %c0_i32 : i32
  }
  func.func @transform_7(%arg0: i32) -> (i32, i32) {
    %c0_i32 = arith.constant 0 : i32
    %c0_i32_0 = arith.constant 0 : i32
    return %c0_i32, %arg0 : i32, i32
  }
}

</mosaic_0001>

<bundles_post_ra>
// kernel: tpu_custom_call.1
= control target key start
LH: loop header
LB: loop body
LE: loop exit
PB: predicated region body
PF: predicated region fallthrough
CT: control target
= control target key end

     0   :  { %v746_v2 = vmov 1   ;;  %v747_v4 = vmov 0   ;;  %s928_s0 = inlined_call_operand.vmem [shape: f32[2,512], index: 0, kind: input, shape index: {}]   ;;  %s929_s1 = inlined_call_operand.vmem [shape: f32[32,2], index: 1, kind: input, shape index: {}]   ;;  %s930_s2 = inlined_call_operand.vmem [shape: f32[32,1], index: 2, kind: input, shape index: {}]   ;;  %s931_s3 = inlined_call_operand.vmem [shape: f32[32,32], index: 3, kind: input, shape index: {}]   ;;  %s932_s4 = inlined_call_operand.vmem [shape: f32[32,1], index: 4, kind: input, shape index: {}]   ;;  %s933_s5 = inlined_call_operand.vmem [shape: f32[32,1], index: 5, kind: input, shape index: {}]   ;;  %s934_s6 = inlined_call_operand.<no memory space> [shape: f32[1], index: 6, kind: input, shape index: {}]   ;;  %s935_s7 = inlined_call_operand.hbm [shape: f32[1,512], index: 7, kind: output, shape index: {}]  }
   0x1   :  { %v30_v0 = vld [vmem:[%s929_s1 + $0x10] sm:$0xff]  ;;  %v28_v1 = vld [vmem:[%s929_s1] sm:$0xff]  ;;  %646 = vset.pattern.permute.xlu0 %v746_v2  ;;  %644 = vset.pattern.permute.xlu1 %v746_v2  ;;  %v29_v3 = vld [vmem:[%s929_s1 + $0x8] sm:$0xff] }
   0x2   :  { %132 = vperm.xlu0 %646, %v30_v0   ;;  %124 = vperm.xlu1 %644, %v28_v1  }
   0x6   :  { %647 = vset.pattern.permute.xlu0 %v747_v4  ;;  %128 = vperm.xlu1 %644, %v29_v3  }
   0x7   :  { %13 = vsyncpa [#allocation4], 0  ;;  %52 = vperm.xlu0 %647, %v28_v1   ;;  %v31_v5 = vld [vmem:[%s929_s1 + $0x18] sm:$0xff]  ;;  %v33_v6 = vld [vmem:[%s930_s2 + $0x8] sm:$0xff]  ;;  %v748_v18 = vmov 0.0   ;;  %v71_v19 = vlaneseq  ;;  %vm279_vm0 = vcmask 261120  }
   0x8   :  { %v32_v7 = vld [vmem:[%s930_s2] sm:$0xff]  ;;  %v34_v9 = vld [vmem:[%s930_s2 + $0x10] sm:$0xff]  ;;  %v35_v11 = vld [vmem:[%s930_s2 + $0x18] sm:$0xff]  ;;  %356 = vmatprep.mubr.f32.mxu0 %v748_v18  ;;  %445 = vmatprep.mubr.f32.mxu1 %v748_v18 }
   0x9   :  { %v40_v8 = vld [vmem:[%s932_s4] sm:$0xff]  ;;  %v42_v10 = vld [vmem:[%s932_s4 + $0x10] sm:$0xff]  ;;  %v41_v13 = vld [vmem:[%s932_s4 + $0x8] sm:$0xff]  ;;  %v842_v20 = vshrl.u32 %v71_v19, 7  ;;  %vm598_vm1 = vcmp.lt.s32.totalorder %v71_v19, 512 }
   0xa   :  { %645 = vset.pattern.permute.xlu1 %v747_v4  ;;  %v44_v12 = vld [vmem:[%s933_s5] sm:$0xff]  ;;  %v46_v14 = vld [vmem:[%s933_s5 + $0x10] sm:$0xff]  ;;  %v43_v15 = vld [vmem:[%s932_s4 + $0x18] sm:$0xff] }
   0xb   :  { %57 = vperm.xlu0 %647, %v29_v3   ;;  %67 = vperm.xlu1 %645, %v31_v5   ;;  %v45_v16 = vld [vmem:[%s933_s5 + $0x8] sm:$0xff]  ;;  %v47_v17 = vld [vmem:[%s933_s5 + $0x18] sm:$0xff]  ;;  %v141_v21 = vsub.s32 1, %v842_v20  ;;  %v145_v22 = vsub.s32 3, %v842_v20  ;;  %v49_v23 = vld [vmem:[%s928_s0] sm:$0xff]  ;;  %v149_v24 = vsub.s32 5, %v842_v20 }
   0xc   :  { %v153_v27 = vsub.s32 7, %v842_v20  ;;  %v73_v28 = vsub.s32 0, %v842_v20  ;;  %v77_v29 = vsub.s32 2, %v842_v20  ;;  %v81_v30 = vsub.s32 4, %v842_v20 }
   0xd   :  { %v142_v31 = vrot.slane %v49_v23, %v141_v21  ;;  %v146_v32 = vrot.slane %v49_v23, %v145_v22  ;;  %v85_v33 = vsub.s32 6, %v842_v20  ;;  %v150_v34 = vrot.slane %v49_v23, %v149_v24 }
   0xe   :  { %v154_v36 = vrot.slane %v49_v23, %v153_v27  ;;  %v74_v37 = vrot.slane %v49_v23, %v73_v28  ;;  %v78_v38 = vrot.slane %v49_v23, %v77_v29  ;;  %v82_v40 = vrot.slane %v49_v23, %v81_v30 }
   0xf   :  { %62 = vperm.xlu0 %647, %v30_v0   ;;  %648 = vset.pattern.permute.xlu1 %v746_v2  ;;  %v162_v41 = vrot.slane %v142_v31, %v141_v21  ;;  %v166_v42 = vrot.slane %v146_v32, %v141_v21  ;;  %v86_v43 = vrot.slane %v49_v23, %v85_v33 }
  0x10   :  { %136 = vperm.xlu1 %648, %v31_v5   ;;  %v855_v44 = vrot.slane %v150_v34, %v141_v21  ;;  %v857_v45 = vrot.slane %v154_v36, %v141_v21  ;;  %v94_v46 = vrot.slane %v74_v37, %v73_v28  ;;  %v98_v47 = vrot.slane %v78_v38, %v73_v28 }
  0x11   :  { %v861_v50 = vrot.slane %v82_v40, %v73_v28  ;;  %v863_v53 = vrot.slane %v86_v43, %v73_v28 }
  0x13   :  { %214 = vperm.xlu0 %647, %v33_v6  }
  0x14   :  { %649 = vset.pattern.permute.xlu1 %v747_v4 }
  0x15   :  { %209 = vperm.xlu1 %649, %v32_v7  }
  0x17   :  { %261 = vperm.xlu0 %647, %v40_v8  }
  0x19   :  { %219 = vperm.xlu1 %649, %v34_v9  }
  0x1b   :  { %271 = vperm.xlu0 %647, %v42_v10  }
  0x1d   :  { %224 = vperm.xlu1 %649, %v35_v11  }
  0x1f   :  { %488 = vperm.xlu0 %647, %v44_v12  }
  0x21   :  { %266 = vperm.xlu1 %649, %v41_v13  }
  0x23   :  { %498 = vperm.xlu0 %647, %v46_v14  }
  0x25   :  { %276 = vperm.xlu1 %649, %v43_v15  }
  0x29   :  { %493 = vperm.xlu1 %649, %v45_v16  }
  0x2d   :  { %503 = vperm.xlu1 %649, %v47_v17  }
  0x81   :  { %v125_v25 = vpop.permute.xlu1 %124  ;;  %v133_v26 = vpop.permute.xlu0 %132 }
  0x82   :  { %v175_v51 = vmul.f32 %v162_v41, %v125_v25  ;;  %v176_v52 = vmul.f32 %v166_v42, %v125_v25  ;;  %v177_v54 = vmul.f32 %v855_v44, %v125_v25  ;;  %v178_v58 = vmul.f32 %v857_v45, %v125_v25 }
  0x83   :  { %v183_v63 = vmul.f32 %v162_v41, %v133_v26  ;;  %v184_v4 = vmul.f32 %v166_v42, %v133_v26  ;;  %v185_v8 = vmul.f32 %v855_v44, %v133_v26  ;;  %v186_v12 = vmul.f32 %v857_v45, %v133_v26 }
  0x85   :  { %v129_v35 = vpop.permute.xlu1 %128 }
  0x86   :  { %v53_v39 = vpop.permute.xlu0 %52  ;;  %v179_v0 = vmul.f32 %v162_v41, %v129_v35  ;;  %v180_v1 = vmul.f32 %v166_v42, %v129_v35  ;;  %v181_v2 = vmul.f32 %v855_v44, %v129_v35  ;;  %v182_v5 = vmul.f32 %v857_v45, %v129_v35 }
  0x87   :  { %v107_v59 = vmul.f32 %v94_v46, %v53_v39  ;;  %v108_v60 = vmul.f32 %v98_v47, %v53_v39  ;;  %v109_v6 = vmul.f32 %v861_v50, %v53_v39  ;;  %v110_v7 = vmul.f32 %v863_v53, %v53_v39 }
  0x89   :  { %v191_v15 = vadd.f32 %v175_v51, %v107_v59  ;;  %v192_v16 = vadd.f32 %v176_v52, %v108_v60  ;;  %v193_v27 = vadd.f32 %v177_v54, %v109_v6  ;;  %v194_v28 = vadd.f32 %v178_v58, %v110_v7 }
  0x8a   :  { %v58_v48 = vpop.permute.xlu0 %57  ;;  %v859_v49 = vpop.permute.xlu1 %67 }
  0x8b   :  { %v111_v55 = vmul.f32 %v94_v46, %v58_v48  ;;  %v112_v56 = vmul.f32 %v98_v47, %v58_v48  ;;  %v113_v57 = vmul.f32 %v861_v50, %v58_v48  ;;  %v114_v61 = vmul.f32 %v863_v53, %v58_v48 }
  0x8c   :  { %v119_v30 = vmul.f32 %v94_v46, %v859_v49  ;;  %v120_v26 = vmul.f32 %v98_v47, %v859_v49 }
  0x8d   :  { %v195_v9 = vadd.f32 %v179_v0, %v111_v55  ;;  %v196_v10 = vadd.f32 %v180_v1, %v112_v56  ;;  %v197_v11 = vadd.f32 %v181_v2, %v113_v57  ;;  %v198_v14 = vadd.f32 %v182_v5, %v114_v61 }
  0x8e   :  { %v63_v62 = vpop.permute.xlu0 %62  ;;  %v122_v56 = vmul.f32 %v863_v53, %v859_v49 }
  0x8f   :  { %v137_v3 = vpop.permute.xlu1 %136  ;;  %v115_v17 = vmul.f32 %v94_v46, %v63_v62  ;;  %v116_v24 = vmul.f32 %v98_v47, %v63_v62  ;;  %v117_v31 = vmul.f32 %v861_v50, %v63_v62  ;;  %v118_v33 = vmul.f32 %v863_v53, %v63_v62 }
  0x90   :  { %v187_v35 = vmul.f32 %v162_v41, %v137_v3  ;;  %v188_v38 = vmul.f32 %v166_v42, %v137_v3  ;;  %v189_v46 = vmul.f32 %v855_v44, %v137_v3  ;;  %v190_v47 = vmul.f32 %v857_v45, %v137_v3 }
  0x91   :  { %v199_v37 = vadd.f32 %v183_v63, %v115_v17  ;;  %v200_v40 = vadd.f32 %v184_v4, %v116_v24  ;;  %v201_v48 = vadd.f32 %v185_v8, %v117_v31  ;;  %v202_v52 = vadd.f32 %v186_v12, %v118_v33  ;;  %v36_v24 = vld [vmem:[%s931_s3] sm:$0xff] }
  0x92   :  { %v215_v13 = vpop.permute.xlu0 %214  ;;  %v121_v41 = vmul.f32 %v861_v50, %v859_v49  ;;  %v203_v42 = vadd.f32 %v187_v35, %v119_v30  ;;  %v204_v44 = vadd.f32 %v188_v38, %v120_v26  ;;  %v206_v45 = vadd.f32 %v190_v47, %v122_v56 }
  0x93   :  { %v231_v21 = vadd.f32 %v215_v13, %v195_v9  ;;  %v232_v22 = vadd.f32 %v215_v13, %v196_v10  ;;  %v233_v23 = vadd.f32 %v215_v13, %v197_v11  ;;  %v234_v25 = vadd.f32 %v215_v13, %v198_v14 }
  0x94   :  { %v210_v29 = vpop.permute.xlu1 %209  ;;  %v205_v59 = vadd.f32 %v189_v46, %v121_v41 }
  0x95   :  { %650 = vtanh.f32 %v231_v21  ;;  %v227_v32 = vadd.f32 %v210_v29, %v191_v15  ;;  %v228_v34 = vadd.f32 %v210_v29, %v192_v16  ;;  %v229_v36 = vadd.f32 %v210_v29, %v193_v27  ;;  %v38_v27 = vld [vmem:[%s931_s3 + $0x10] sm:$0xff] }
  0x96   :  { %652 = vtanh.f32 %v232_v22  ;;  %v230_v39 = vadd.f32 %v210_v29, %v194_v28  ;;  %v39_v28 = vld [vmem:[%s931_s3 + $0x18] sm:$0xff]  ;;  %v262_v29 = vpop.permute.xlu0 %261 }
  0x97   :  { %654 = vtanh.f32 %v233_v23 }
  0x98   :  { %656 = vtanh.f32 %v234_v25  ;;  %v220_v43 = vpop.permute.xlu1 %219  ;;  %v37_v25 = vld [vmem:[%s931_s3 + $0x8] sm:$0xff] }
  0x99   :  { %658 = vtanh.f32 %v227_v32  ;;  %v235_v51 = vadd.f32 %v220_v43, %v199_v37  ;;  %v236_v54 = vadd.f32 %v220_v43, %v200_v40  ;;  %v237_v55 = vadd.f32 %v220_v43, %v201_v48 }
  0x9a   :  { %660 = vtanh.f32 %v228_v34  ;;  %v238_v57 = vadd.f32 %v220_v43, %v202_v52 }
  0x9b   :  { %662 = vtanh.f32 %v229_v36 }
  0x9c   :  { %664 = vtanh.f32 %v230_v39  ;;  %v225_v58 = vpop.permute.xlu1 %224 }
  0x9d   :  { %666 = vtanh.f32 %v235_v51  ;;  %v239_v60 = vadd.f32 %v225_v58, %v203_v42  ;;  %v240_v61 = vadd.f32 %v225_v58, %v204_v44  ;;  %v241_v63 = vadd.f32 %v225_v58, %v205_v59  ;;  %v272_v51 = vpop.permute.xlu0 %271 }
  0x9e   :  { %668 = vtanh.f32 %v236_v54  ;;  %v242_v0 = vadd.f32 %v225_v58, %v206_v45 }
  0x9f   :  { %v651_v62 = vpop.eup %650  ;;  %670 = vtanh.f32 %v237_v55 }
  0xa0   :  { %v653_v50 = vpop.eup %652  ;;  %672 = vtanh.f32 %v238_v57  ;;  %v267_v36 = vpop.permute.xlu1 %266 }
  0xa1   :  { %v655_v1 = vpop.eup %654  ;;  %674 = vtanh.f32 %v239_v60 }
  0xa2   :  { %v657_v2 = vpop.eup %656  ;;  %676 = vtanh.f32 %v240_v61 }
  0xa3   :  { %v659_v49 = vpop.eup %658  ;;  %678 = vtanh.f32 %v241_v63 }
  0xa4   :  { %v661_v53 = vpop.eup %660  ;;  %680 = vtanh.f32 %v242_v0  ;;  %v625_v3 = vpack.c.bf16 %v651_v62, %v659_v49  ;;  %v277_v56 = vpop.permute.xlu1 %276 }
  0xa5   :  { %v663_v4 = vpop.eup %662  ;;  %v623_v5 = vpack.c.bf16 %v653_v50, %v661_v53 }
  0xa6   :  { %v665_v6 = vpop.eup %664  ;;  %v633_v7 = vpack.c.bf16 %v655_v1, %v663_v4  ;;  %v489_v1 = vpop.permute.xlu0 %488 }
  0xa7   :  { %v667_v8 = vpop.eup %666  ;;  %624 = vmatprep.subr.bf16.mxu0 %v623_v5  ;;  %v631_v9 = vpack.c.bf16 %v657_v2, %v665_v6 }
  0xa8   :  { %v669_v10 = vpop.eup %668  ;;  %626 = vmatpush1.bf16.msra.mxu0 %v625_v3  ;;  %v494_v5 = vpop.permute.xlu1 %493 }
  0xa9   :  { %v671_v11 = vpop.eup %670  ;;  %632 = vmatprep.subr.bf16.mxu1 %v631_v9 }
  0xaa   :  { %v673_v12 = vpop.eup %672  ;;  %634 = vmatpush1.bf16.msra.mxu1 %v633_v7 }
  0xab   :  { %v675_v13 = vpop.eup %674 }
  0xac   :  { %v677_v14 = vpop.eup %676  ;;  %v629_v15 = vpack.c.bf16 %v675_v13, %v667_v8 }
  0xad   :  { %v679_v16 = vpop.eup %678  ;;  %v627_v17 = vpack.c.bf16 %v677_v14, %v669_v10 }
  0xae   :  { %v681_v21 = vpop.eup %680  ;;  %v637_v22 = vpack.c.bf16 %v679_v16, %v671_v11 }
  0xaf   :  { %628 = vmatprep.subr.bf16.mxu0 %v627_v17  ;;  %v635_v23 = vpack.c.bf16 %v681_v21, %v673_v12  ;;  %v499_v17 = vpop.permute.xlu0 %498 }
  0xb0   :  { %630 = vmatpush1.bf16.msra.mxu0 %v629_v15 }
  0xb1   :  { %636 = vmatprep.subr.bf16.mxu1 %v635_v23 }
  0xb2   :  { %638 = vmatpush1.bf16.msra.mxu1 %v637_v22 }
  0xb3   :  { %615 = vmatmul.mubr.msk.f32.vlgmr.msra.gmra.mrb[0].mxu0 %vm279_vm0, %v36_v24 }
  0xb4   :  { %362 = vmatprep.mubr.f32.mxu0 %v748_v18 }
  0xb5   :  { %619 = vmatmul.mubr.msk.f32.vlgmr.msra.gmra.mrb[0].mxu1 %vm279_vm0, %v36_v24 }
  0xb6   :  { %451 = vmatprep.mubr.f32.mxu1 %v748_v18 }
  0xb7   :  { %616 = vmatmul.mubr.msk.f32.gmra.mrb[2].mxu0 %vm279_vm0, %v37_v25 }
  0xb8   :  { %368 = vmatprep.mubr.f32.mxu0 %v748_v18 }
  0xb9   :  { %620 = vmatmul.mubr.msk.f32.gmra.mrb[2].mxu1 %vm279_vm0, %v37_v25 }
  0xba   :  { %457 = vmatprep.mubr.f32.mxu1 %v748_v18 }
  0xbb   :  { %617 = vmatmul.mubr.msk.f32.gmra.mrb[4].mxu0 %vm279_vm0, %v38_v27 }
  0xbc   :  { %374 = vmatprep.mubr.f32.mxu0 %v748_v18 }
  0xbd   :  { %621 = vmatmul.mubr.msk.f32.gmra.mrb[4].mxu1 %vm279_vm0, %v38_v27 }
  0xbe   :  { %463 = vmatprep.mubr.f32.mxu1 %v748_v18 }
  0xbf   :  { %618 = vmatmul.mubr.msk.f32.gmra.mrb[6].mxu0 %vm279_vm0, %v39_v28 }
  0xc1   :  { %622 = vmatmul.mubr.msk.f32.gmra.mrb[6].mxu1 %vm279_vm0, %v39_v28 }
 0x186   :  { %v358_v30 = vpop.f32.mrb[0].mxu0 }
 0x187   :  { %v359_v31 = vadd.f32 %v358_v30, %v262_v29  ;;  %v360_v32 = vpop.f32.mrb[1].mxu0 }
 0x188   :  { %v447_v26 = vpop.f32.mrb[0].mxu1  ;;  %v361_v33 = vadd.f32 %v360_v32, %v262_v29 }
 0x189   :  { %682 = vtanh.f32 %v359_v31  ;;  %v448_v34 = vadd.f32 %v447_v26, %v262_v29  ;;  %v449_v35 = vpop.f32.mrb[1].mxu1 }
 0x18a   :  { %684 = vtanh.f32 %v361_v33  ;;  %v450_v37 = vadd.f32 %v449_v35, %v262_v29  ;;  %v364_v38 = vpop.f32.mrb[2].mxu0 }
 0x18b   :  { %686 = vtanh.f32 %v448_v34  ;;  %v365_v39 = vadd.f32 %v364_v38, %v267_v36  ;;  %v366_v18 = vpop.f32.mrb[3].mxu0  ;;  %v504_v34 = vpop.permute.xlu1 %503 }
 0x18c   :  { %688 = vtanh.f32 %v450_v37  ;;  %v453_v40 = vpop.f32.mrb[2].mxu1  ;;  %v367_v43 = vadd.f32 %v366_v18, %v267_v36 }
 0x18d   :  { %690 = vtanh.f32 %v365_v39  ;;  %v454_v46 = vadd.f32 %v453_v40, %v267_v36  ;;  %v455_v48 = vpop.f32.mrb[3].mxu1 }
 0x18e   :  { %692 = vtanh.f32 %v367_v43  ;;  %v456_v47 = vadd.f32 %v455_v48, %v267_v36  ;;  %v370_v52 = vpop.f32.mrb[4].mxu0 }
 0x18f   :  { %694 = vtanh.f32 %v454_v46  ;;  %v371_v54 = vadd.f32 %v370_v52, %v272_v51  ;;  %v372_v41 = vpop.f32.mrb[5].mxu0 }
 0x190   :  { %696 = vtanh.f32 %v456_v47  ;;  %v459_v55 = vpop.f32.mrb[4].mxu1  ;;  %v373_v42 = vadd.f32 %v372_v41, %v272_v51 }
 0x191   :  { %698 = vtanh.f32 %v371_v54  ;;  %v460_v57 = vadd.f32 %v459_v55, %v272_v51  ;;  %v461_v44 = vpop.f32.mrb[5].mxu1 }
 0x192   :  { %700 = vtanh.f32 %v373_v42  ;;  %v462_v58 = vadd.f32 %v461_v44, %v272_v51  ;;  %v376_v59 = vpop.f32.mrb[6].mxu0 }
 0x193   :  { %v683_v60 = vpop.eup %682  ;;  %702 = vtanh.f32 %v460_v57  ;;  %v377_v45 = vadd.f32 %v376_v59, %v277_v56  ;;  %v378_v61 = vpop.f32.mrb[7].mxu0 }
 0x194   :  { %v685_v62 = vpop.eup %684  ;;  %704 = vtanh.f32 %v462_v58  ;;  %v465_v63 = vpop.f32.mrb[6].mxu1  ;;  %v379_v50 = vadd.f32 %v378_v61, %v277_v56  ;;  %v506_v7 = vmul.f32 %v683_v60, %v489_v1 }
 0x195   :  { %v687_v0 = vpop.eup %686  ;;  %706 = vtanh.f32 %v377_v45  ;;  %v466_v2 = vadd.f32 %v465_v63, %v277_v56  ;;  %v467_v49 = vpop.f32.mrb[7].mxu1  ;;  %v507_v10 = vmul.f32 %v685_v62, %v489_v1 }
 0x196   :  { %v689_v53 = vpop.eup %688  ;;  %708 = vtanh.f32 %v379_v50  ;;  %v468_v3 = vadd.f32 %v467_v49, %v277_v56  ;;  %v508_v13 = vmul.f32 %v687_v0, %v489_v1 }
 0x197   :  { %v691_v4 = vpop.eup %690  ;;  %710 = vtanh.f32 %v466_v2  ;;  %v509_v21 = vmul.f32 %v689_v53, %v489_v1 }
 0x198   :  { %v693_v6 = vpop.eup %692  ;;  %v510_v8 = vmul.f32 %v691_v4, %v494_v5  ;;  %712 = vtanh.f32 %v468_v3  ;;  %v558_v3 = vstv %s934_s6  ;;  %s750_s6 = smov [#allocation3]  }
 0x199   :  { %v695_v9 = vpop.eup %694  ;;  %v511_v11 = vmul.f32 %v693_v6, %v494_v5  ;;  %s607_s15 = sshll.u32 %s750_s6, 4  ;;  %s608_s15 = int_to_ptr.vmem [resolvable:$true] %s607_s15 }
 0x19a   :  { %v697_v12 = vpop.eup %696  ;;  %v522_v14 = vadd.f32 %v510_v8, %v506_v7  ;;  %v512_v15 = vmul.f32 %v695_v9, %v494_v5  ;;  %s722_s16 = scalar_lea.vmem %s608_s15, 64  ;;  %p727_p1 = scmp.lt.s32.totalorder %s608_s15, %s608_s15 }
 0x19b   :  { %v699_v16 = vpop.eup %698  ;;  %v531_v22 = vadd.f32 %v511_v11, %v507_v10  ;;  %v513_v23 = vmul.f32 %v697_v12, %v494_v5  ;;  %p723_p0 = scmp.ne.s32.totalorder %s608_s15, %s722_s16  ;;  %p728_p2 = scmp.lt.s32.totalorder %s722_s16, %s722_s16 }
 0x19c   :  { %v701_v24 = vpop.eup %700  ;;  %v540_v25 = vadd.f32 %v512_v15, %v508_v13  ;;  %v514_v27 = vmul.f32 %v699_v16, %v499_v17 }
 0x19d   :  { %v703_v28 = vpop.eup %702  ;;  %v549_v29 = vadd.f32 %v513_v23, %v509_v21  ;;  %v515_v30 = vmul.f32 %v701_v24, %v499_v17  ;;  %p729_p3 = por %p728_p2, %p727_p1 }
 0x19e   :  { %v705_v31 = vpop.eup %704  ;;  %v523_v32 = vadd.f32 %v522_v14, %v514_v27  ;;  %v516_v26 = vmul.f32 %v703_v28, %v499_v17  ;;  %v749_v14 = vmov 1966171168  }
 0x19f   :  { %v707_v33 = vpop.eup %706  ;;  %v532_v35 = vadd.f32 %v531_v22, %v515_v30  ;;  %v517_v36 = vmul.f32 %v705_v31, %v499_v17  ;;  %v574_v15 = vunpack.c.l.s4 %v749_v14  ;;  %p730_p4 = pnand %p729_p3, %p723_p0 }
 0x1a0   :  { %v709_v37 = vpop.eup %708  ;;  %v541_v38 = vadd.f32 %v540_v25, %v516_v26  ;;  %v518_v39 = vmul.f32 %v707_v33, %v504_v34 }
 0x1a1   :  { %v711_v18 = vpop.eup %710  ;;  %v550_v40 = vadd.f32 %v549_v29, %v517_v36  ;;  %v519_v43 = vmul.f32 %v709_v37, %v504_v34  ;;  %v575_v16 = vunpack.c.0.s8 %v574_v15 }
 0x1a2   :  { %v713_v46 = vpop.eup %712  ;;  %v524_v48 = vadd.f32 %v523_v32, %v518_v39  ;;  %v520_v51 = vmul.f32 %v711_v18, %v504_v34 }
 0x1a3   :  { %v533_v47 = vadd.f32 %v532_v35, %v519_v43  ;;  %v521_v52 = vmul.f32 %v713_v46, %v504_v34  ;;  %v578_v21 = vsub.s32 %v575_v16, %v842_v20 }
 0x1a4   :  { %v525_v54 = vrot.slane %v524_v48, 4  ;;  %v542_v41 = vadd.f32 %v541_v38, %v520_v51 }
 0x1a5   :  { %v534_v55 = vrot.slane %v533_v47, 4  ;;  %v551_v42 = vadd.f32 %v550_v40, %v521_v52 }
 0x1a6   :  { %v526_v56 = vadd.f32 %v525_v54, %v524_v48  ;;  %v543_v57 = vrot.slane %v542_v41, 4 }
 0x1a7   :  { %v535_v44 = vadd.f32 %v534_v55, %v533_v47  ;;  %v552_v58 = vrot.slane %v551_v42, 4 }
 0x1a8   :  { %v527_v59 = vrot.slane %v526_v56, 2  ;;  %v544_v60 = vadd.f32 %v543_v57, %v542_v41 }
 0x1a9   :  { %v536_v45 = vrot.slane %v535_v44, 2  ;;  %v553_v61 = vadd.f32 %v552_v58, %v551_v42 }
 0x1aa   :  { %v528_v62 = vadd.f32 %v527_v59, %v526_v56  ;;  %v545_v63 = vrot.slane %v544_v60, 2 }
 0x1ab   :  { %v537_v50 = vadd.f32 %v536_v45, %v535_v44  ;;  %v554_v0 = vrot.slane %v553_v61, 2 }
 0x1ac   :  { %v529_v1 = vrot.slane %v528_v62, 1  ;;  %v546_v2 = vadd.f32 %v545_v63, %v544_v60 }
 0x1ad   :  { %v538_v49 = vrot.slane %v537_v50, 1  ;;  %v555_v53 = vadd.f32 %v554_v0, %v553_v61 }
 0x1ae   :  { %v530_v4 = vadd.f32 %v529_v1, %v528_v62  ;;  %v547_v5 = vrot.slane %v546_v2, 1 }
 0x1af   :  { %v539_v6 = vadd.f32 %v538_v49, %v537_v50  ;;  %v556_v7 = vrot.slane %v555_v53, 1 }
 0x1b0   :  { %v548_v8 = vadd.f32 %v547_v5, %v546_v2  ;;  %v559_v9 = vadd.f32 %v558_v3, %v530_v4 }
 0x1b1   :  { %v557_v10 = vadd.f32 %v556_v7, %v555_v53  ;;  %v560_v11 = vadd.f32 %v558_v3, %v539_v6 }
 0x1b2   :  { %v561_v12 = vadd.f32 %v558_v3, %v548_v8  ;;  %714 = vtanh.f32 %v559_v9 }
 0x1b3   :  { %v562_v13 = vadd.f32 %v558_v3, %v557_v10  ;;  %716 = vtanh.f32 %v560_v11 }
 0x1b4   :  { %718 = vtanh.f32 %v561_v12 }
 0x1b5   :  { %720 = vtanh.f32 %v562_v13 }
 0x1bc   :  { %v715_v17 = vpop.eup %714 }
 0x1bd   :  { %v717_v22 = vpop.eup %716 }
 0x1be   :  { %v719_v23 = vpop.eup %718  ;;  %v571_v24 = vcombine.low %v715_v17, %v717_v22 }
 0x1bf   :  { %v721_v25 = vpop.eup %720 }
 0x1c0   :  { %v572_v27 = vcombine.low %v719_v23, %v721_v25  ;;  %v579_v28 = vrot.slane %v571_v24, %v578_v21 }
 0x1c2   :  { %v586_v29 = vrot.slane %v572_v27, %v578_v21 }
 0x1c4   :  { %v587_v30 = vcombine.low %v579_v28, %v586_v29 }
 0x1c6   :  { %v594_v31 = vrot.slane %v587_v30, %v578_v21 }
 0x1c8   :  { %600 = vst.msk [vmem:[#allocation3] sm:$0xf] %vm598_vm1, %v594_v31 }
 0x1c9   :  { %733 = shalt.err (!%p730_p4)
}
 0x1ca   :  { %s734_s19 = scalar_lea.hbm %s935_s7, 64 }
 0x1cb   :  { %p735_p5 = scmp.ne.s32.totalorder %s935_s7, %s734_s19  ;;  %p738_p6 = scmp.lt.u32.totalorder %s734_s19, %s935_s7 }
 0x1cd   :  { %p740_p7 = pnand %p738_p6, %p735_p5 }
 0x1cf   :  { %743 = shalt.err (!%p740_p7)
}
 0x1d0   :  { %610 = dma.vmem_to_hbm [thread:$0]  %s608_s15, 64, %s935_s7, [#allocation4]  }
 0x1d1   :  { %744 = dma.done.wait [#allocation4], 64  }
 0x1d2   :  { %745 = vsyncadd [#allocation4], 4294967232 }
 0x1d3   :  { %614 = vsyncpa [#allocation4], 1 }

</bundles_post_ra>
